<compile_context>
chip_gen: v5e
topology: v5e:2x2
jax: 0.10.0
libtpu: 0.0.40
codegen_flags: <defaults>
</compile_context>

<pallas_src>
import functools

import jax
import jax.numpy as jnp
import numpy as np
from jax import lax
from jax.experimental import pallas as pl
from jax.experimental.pallas import tpu as pltpu


def _round_up(x, m):
    return (x + m - 1) // m * m


def _is_pow2(v):
    return v > 0 and (v & (v - 1)) == 0


def residual_block_kernel(
    x_ref,     # (Cin_p, L)            input: channels on sublanes, N*H*W on lanes
    w1c_ref,   # (2*Cout_p, 9*Cin_p)   [conv1 * s1 ; wx embedded at center tap]
    b1_ref,    # (Cout_p, 1)           folded bn1 shift
    w2_ref,    # (Cout_p, 9*Cout_p)    conv2 * s2, taps folded into K
    bo_ref,    # (Cout_p, 1)           folded bn2 shift + 1x1-conv bias
    o_ref,     # (Cout_p, L)           output
    colx_ref,  # (9*Cin_p, L)          VMEM scratch: im2col(x)
    coly_ref,  # (9*Cout_p, L)         VMEM scratch: im2col(out1)
    *,
    H, W, N, Cin_p, Cout_p,
):
    HW = H * W
    L = N * HW

    # Static per-image coordinates along the lane axis (single grid step, so
    # this runs exactly once; AND/shift when sizes are powers of two).
    pos = lax.broadcasted_iota(jnp.int32, (1, L), 1)
    if _is_pow2(HW) and _is_pow2(W):
        pin = pos & (HW - 1)
        col = pin & (W - 1)
        row = pin >> (W.bit_length() - 1)
    else:
        pin = pos % HW
        col = pin % W
        row = pin // W

    # Tap table for a 3x3, padding=1 convolution on the flattened (per-image)
    # spatial axis.  Tap (oy, ox) sources flat position p + oy*W + ox, valid
    # only if the source pixel lies inside the same image (zero padding
    # otherwise); the masks also kill roll wraparound / cross-image leakage.
    offsets = [(oy, ox) for oy in (-1, 0, 1) for ox in (-1, 0, 1)]
    taps = []
    for oy, ox in offsets:
        conds = []
        if oy == -1:
            conds.append(row >= 1)
        elif oy == 1:
            conds.append(row <= H - 2)
        if ox == -1:
            conds.append(col >= 1)
        elif ox == 1:
            conds.append(col <= W - 2)
        mask = functools.reduce(jnp.logical_and, conds) if conds else None
        shift = (-(oy * W + ox)) % L               # non-negative lane roll
        taps.append((shift, mask))

    def im2col_into(v, dst_ref, c):
        """Write the 9 shifted+masked taps of v (c, L) into dst_ref (9*c, L)."""
        for t, (shift, mask) in enumerate(taps):
            part = pltpu.roll(v, shift, axis=1) if shift else v
            if mask is not None:
                part = jnp.where(mask, part, 0.0)
            dst_ref[t * c:(t + 1) * c, :] = part   # static, sublane-aligned slice

    # ---- conv1 (3x3, s1 folded) + residual 1x1: one MXU contraction --------
    im2col_into(x_ref[...], colx_ref, Cin_p)
    comb = jnp.dot(w1c_ref[...], colx_ref[...],
                   preferred_element_type=jnp.float32)       # (2*Cout_p, L)
    out1 = jnp.maximum(comb[:Cout_p, :] + b1_ref[...], 0.0)  # bn1 shift + relu
    res = comb[Cout_p:, :]                                    # 1x1 conv (bias in bo)

    # ---- conv2 (3x3, s2 folded), add residual + merged bias, relu ----------
    im2col_into(out1, coly_ref, Cout_p)
    acc2 = jnp.dot(w2_ref[...], coly_ref[...],
                   preferred_element_type=jnp.float32)        # (Cout_p, L)
    o_ref[...] = jnp.maximum(acc2 + res + bo_ref[...], 0.0).astype(o_ref.dtype)


def _prepare_kernel_params(params, cin, cout, cin_p, cout_p):
    """Fold BN scales into weights, merge biases, pack to kernel layout."""
    f32 = jnp.float32

    def pack_3x3(w, ci, cip):   # HWIO (3,3,ci,cout) -> (cout_p, 9*cip)
        wp = jnp.zeros((3, 3, cip, cout_p), f32).at[:, :, :ci, :cout].set(w)
        return jnp.transpose(wp.reshape(9, cip, cout_p),
                             (2, 0, 1)).reshape(cout_p, 9 * cip)

    def pad_vec(v):             # (cout,) -> (cout_p, 1)
        return jnp.zeros((cout_p, 1), f32).at[:cout, 0].set(v)

    # conv1 with bn1 scale folded into output-channel rows.
    w1_t = pack_3x3(params["w1"] * params["s1"][None, None, None, :], cin, cin_p)
    # residual 1x1 embedded into the center-tap (t=4) columns of extra rows.
    wx_rows = jnp.zeros((cout_p, 9 * cin_p), f32)
    wx_rows = wx_rows.at[:cout, 4 * cin_p:4 * cin_p + cin].set(params["wx"].T)
    w1c = jnp.concatenate([w1_t, wx_rows], axis=0)            # (2*cout_p, 9*cin_p)

    # conv2 with bn2 scale folded; bn2 shift + 1x1-conv bias merged.
    w2_t = pack_3x3(params["w2"] * params["s2"][None, None, None, :], cout, cout_p)

    return dict(
        w1c=w1c,
        b1=pad_vec(params["b1"]),
        w2=w2_t,
        bo=pad_vec(params["b2"] + params["bx"]),
    )


def residual_block_pallas(x_nchw, params):
    """x_nchw: (N, Cin, H, W) float32.  Returns (N, Cout, H, W)."""
    N, Cin, H, W = x_nchw.shape
    Cout = params["w1"].shape[-1]
    HW = H * W
    L = N * HW
    cin_p = _round_up(Cin, 8)     # sublane-align the channel axis
    cout_p = _round_up(Cout, 8)

    # (N, Cin, H, W) -> (Cin_p, N*HW): channels on sublanes, batch folded into
    # the lane axis so the whole block runs in a single grid step.
    x = jnp.transpose(x_nchw.reshape(N, Cin, HW), (1, 0, 2)).reshape(Cin, L)
    if cin_p != Cin:
        x = jnp.pad(x, ((0, cin_p - Cin), (0, 0)))

    kp = _prepare_kernel_params(params, Cin, Cout, cin_p, cout_p)
    kernel = functools.partial(residual_block_kernel, H=H, W=W, N=N,
                               Cin_p=cin_p, Cout_p=cout_p)

    def full_spec(shape):
        return pl.BlockSpec(shape, lambda i: (0,) * len(shape))

    out = pl.pallas_call(
        kernel,
        out_shape=jax.ShapeDtypeStruct((cout_p, L), jnp.float32),
        grid_spec=pltpu.PrefetchScalarGridSpec(
            num_scalar_prefetch=0,
            grid=(1,),
            in_specs=[full_spec((cin_p, L)),
                      full_spec(kp["w1c"].shape),
                      full_spec(kp["b1"].shape),
                      full_spec(kp["w2"].shape),
                      full_spec(kp["bo"].shape)],
            out_specs=full_spec((cout_p, L)),
            scratch_shapes=[pltpu.VMEM((9 * cin_p, L), jnp.float32),
                            pltpu.VMEM((9 * cout_p, L), jnp.float32)],
        ),
        compiler_params=pltpu.CompilerParams(
            dimension_semantics=("arbitrary",)),
    )(x, kp["w1c"], kp["b1"], kp["w2"], kp["bo"])

    # metadata-only cleanup: drop channel padding, unfold batch, unflatten HW.
    return jnp.transpose(out[:Cout].reshape(Cout, N, HW),
                         (1, 0, 2)).reshape(N, Cout, H, W)


def make_params(key, in_channels, out_channels):
    """Deterministic synthetic parameters (HWIO conv weights, folded BN)."""
    ks = jax.random.split(key, 10)
    eps = 1e-5

    wx = 0.1 * jax.random.normal(ks[0], (in_channels, out_channels), jnp.float32)
    bx = 0.1 * jax.random.normal(ks[1], (out_channels,), jnp.float32)

    w1 = 0.1 * jax.random.normal(ks[2], (3, 3, in_channels, out_channels), jnp.float32)
    w2 = 0.1 * jax.random.normal(ks[3], (3, 3, out_channels, out_channels), jnp.float32)

    g1 = 1.0 + 0.1 * jax.random.normal(ks[4], (out_channels,), jnp.float32)
    be1 = 0.1 * jax.random.normal(ks[5], (out_channels,), jnp.float32)
    m1 = 0.1 * jax.random.normal(ks[6], (out_channels,), jnp.float32)
    v1 = jnp.abs(1.0 + 0.1 * jax.random.normal(ks[7], (out_channels,), jnp.float32))
    s1 = g1 / jnp.sqrt(v1 + eps)
    b1 = be1 - m1 * s1

    g2 = 1.0 + 0.1 * jax.random.normal(ks[8], (out_channels,), jnp.float32)
    be2 = 0.1 * jax.random.normal(ks[9], (out_channels,), jnp.float32)
    m2 = jnp.zeros((out_channels,), jnp.float32)
    v2 = jnp.ones((out_channels,), jnp.float32)
    s2 = g2 / jnp.sqrt(v2 + eps)
    b2 = be2 - m2 * s2

    return dict(wx=wx, bx=bx, w1=w1, s1=s1, b1=b1, w2=w2, s2=s2, b2=b2)


def residual_block_ref(x_nchw, params):
    """Pure-JAX reference (NHWC convs via lax) for validation."""
    x = jnp.transpose(x_nchw, (0, 2, 3, 1))
    dn = ("NHWC", "HWIO", "NHWC")
    conv = functools.partial(lax.conv_general_dilated,
                             window_strides=(1, 1), dimension_numbers=dn)
    residual = conv(x, params["wx"][None, None], padding="VALID") + params["bx"]
    out = conv(x, params["w1"], padding="SAME")
    out = jnp.maximum(out * params["s1"] + params["b1"], 0.0)
    out = conv(out, params["w2"], padding="SAME")
    out = out * params["s2"] + params["b2"]
    out = jnp.maximum(out + residual, 0.0)
    return jnp.transpose(out, (0, 3, 1, 2))


if __name__ == "__main__":
    N, Cin, Cout, H, W = 2, 4, 8, 16, 16

    key = jax.random.PRNGKey(0)
    kx, kp = jax.random.split(key)
    x = jax.random.normal(kx, (N, Cin, H, W), jnp.float32)
    params = make_params(kp, Cin, Cout)

    out = jax.block_until_ready(residual_block_pallas(x, params))
    ref = jax.block_until_ready(residual_block_ref(x, params))
    np.testing.assert_allclose(np.asarray(out), np.asarray(ref),
                               rtol=1e-5, atol=1e-5)

    print("KERNEL_OK")
</pallas_src>

<mosaic_0001>
module attributes {stable_mosaic.version = 11 : i64} {
  func.func @residual_block_kernel(%arg0: i32, %arg1: memref<8x512xf32, #tpu.memory_space<vmem>>, %arg2: memref<16x72xf32, #tpu.memory_space<vmem>>, %arg3: memref<8x1xf32, #tpu.memory_space<vmem>>, %arg4: memref<8x72xf32, #tpu.memory_space<vmem>>, %arg5: memref<8x1xf32, #tpu.memory_space<vmem>>, %arg6: memref<8x512xf32, #tpu.memory_space<vmem>>, %arg7: memref<72x512xf32, #tpu.memory_space<vmem>>, %arg8: memref<72x512xf32, #tpu.memory_space<vmem>>) attributes {dimension_semantics = [#tpu.dimension_semantics<arbitrary>], iteration_bounds = array<i64: 1>, scalar_prefetch = 0 : i64, scratch_operands = 2 : i64, tpu.core_type = #tpu.core_type<tc>, window_params = [{pipeline_mode = #tpu.pipeline_mode<synchronous>, transform_indices = @transform_0, window_bounds = array<i64: 8, 512>}, {pipeline_mode = #tpu.pipeline_mode<synchronous>, transform_indices = @transform_1, window_bounds = array<i64: 16, 72>}, {pipeline_mode = #tpu.pipeline_mode<synchronous>, transform_indices = @transform_2, window_bounds = array<i64: 8, 1>}, {pipeline_mode = #tpu.pipeline_mode<synchronous>, transform_indices = @transform_3, window_bounds = array<i64: 8, 72>}, {pipeline_mode = #tpu.pipeline_mode<synchronous>, transform_indices = @transform_4, window_bounds = array<i64: 8, 1>}, {pipeline_mode = #tpu.pipeline_mode<synchronous>, transform_indices = @transform_5, window_bounds = array<i64: 8, 512>}]} {
    %0 = tpu.iota {dimensions = array<i32: 1>} : vector<1x512xi32>
    %c255_i32 = arith.constant 255 : i32
    %1 = vector.broadcast %c255_i32 : i32 to vector<1x512xi32>
    %2 = arith.andi %0, %1 : vector<1x512xi32>
    %c15_i32 = arith.constant 15 : i32
    %3 = vector.broadcast %c15_i32 : i32 to vector<1x512xi32>
    %4 = arith.andi %2, %3 : vector<1x512xi32>
    %c4_i32 = arith.constant 4 : i32
    %5 = vector.broadcast %c4_i32 : i32 to vector<1x512xi32>
    %6 = arith.shrsi %2, %5 : vector<1x512xi32>
    %c1_i32 = arith.constant 1 : i32
    %7 = vector.broadcast %c1_i32 : i32 to vector<1x512xi32>
    %8 = arith.cmpi sge, %6, %7 : vector<1x512xi32>
    %c1_i32_0 = arith.constant 1 : i32
    %9 = vector.broadcast %c1_i32_0 : i32 to vector<1x512xi32>
    %10 = arith.cmpi sge, %4, %9 : vector<1x512xi32>
    %11 = arith.andi %8, %10 : vector<1x512xi1>
    %c1_i32_1 = arith.constant 1 : i32
    %12 = vector.broadcast %c1_i32_1 : i32 to vector<1x512xi32>
    %13 = arith.cmpi sge, %6, %12 : vector<1x512xi32>
    %c1_i32_2 = arith.constant 1 : i32
    %14 = vector.broadcast %c1_i32_2 : i32 to vector<1x512xi32>
    %15 = arith.cmpi sge, %6, %14 : vector<1x512xi32>
    %c14_i32 = arith.constant 14 : i32
    %16 = vector.broadcast %c14_i32 : i32 to vector<1x512xi32>
    %17 = arith.cmpi sle, %4, %16 : vector<1x512xi32>
    %18 = arith.andi %15, %17 : vector<1x512xi1>
    %c1_i32_3 = arith.constant 1 : i32
    %19 = vector.broadcast %c1_i32_3 : i32 to vector<1x512xi32>
    %20 = arith.cmpi sge, %4, %19 : vector<1x512xi32>
    %c14_i32_4 = arith.constant 14 : i32
    %21 = vector.broadcast %c14_i32_4 : i32 to vector<1x512xi32>
    %22 = arith.cmpi sle, %4, %21 : vector<1x512xi32>
    %c14_i32_5 = arith.constant 14 : i32
    %23 = vector.broadcast %c14_i32_5 : i32 to vector<1x512xi32>
    %24 = arith.cmpi sle, %6, %23 : vector<1x512xi32>
    %c1_i32_6 = arith.constant 1 : i32
    %25 = vector.broadcast %c1_i32_6 : i32 to vector<1x512xi32>
    %26 = arith.cmpi sge, %4, %25 : vector<1x512xi32>
    %27 = arith.andi %24, %26 : vector<1x512xi1>
    %c14_i32_7 = arith.constant 14 : i32
    %28 = vector.broadcast %c14_i32_7 : i32 to vector<1x512xi32>
    %29 = arith.cmpi sle, %6, %28 : vector<1x512xi32>
    %c14_i32_8 = arith.constant 14 : i32
    %30 = vector.broadcast %c14_i32_8 : i32 to vector<1x512xi32>
    %31 = arith.cmpi sle, %6, %30 : vector<1x512xi32>
    %c14_i32_9 = arith.constant 14 : i32
    %32 = vector.broadcast %c14_i32_9 : i32 to vector<1x512xi32>
    %33 = arith.cmpi sle, %4, %32 : vector<1x512xi32>
    %34 = arith.andi %31, %33 : vector<1x512xi1>
    %c0 = arith.constant 0 : index
    %c0_10 = arith.constant 0 : index
    %35 = vector.load %arg1[%c0, %c0_10] : memref<8x512xf32, #tpu.memory_space<vmem>>, vector<8x512xf32>
    %c17_i32 = arith.constant 17 : i32
    %36 = tpu.dynamic_rotate %35 by %c17_i32 dim 1 : vector<8x512xf32>, i32 -> vector<8x512xf32>
    %cst = arith.constant 0.000000e+00 : f32
    %37 = vector.shape_cast %11 : vector<1x512xi1> to vector<1x512xi1>
    %38 = vector.broadcast %37 : vector<1x512xi1> to vector<8x512xi1>
    %39 = vector.broadcast %cst : f32 to vector<8x512xf32>
    %40 = arith.select %38, %36, %39 : vector<8x512xi1>, vector<8x512xf32>
    %c0_11 = arith.constant 0 : index
    %c0_12 = arith.constant 0 : index
    %41 = vector.load %arg7[%c0_11, %c0_12] : memref<72x512xf32, #tpu.memory_space<vmem>>, vector<8x512xf32>
    tpu.vector_store %arg7[%c0_11, %c0_12], %40 {strides = array<i32>} : memref<72x512xf32, #tpu.memory_space<vmem>>, vector<8x512xf32>,
    %c16_i32 = arith.constant 16 : i32
    %42 = tpu.dynamic_rotate %35 by %c16_i32 dim 1 : vector<8x512xf32>, i32 -> vector<8x512xf32>
    %cst_13 = arith.constant 0.000000e+00 : f32
    %43 = vector.shape_cast %13 : vector<1x512xi1> to vector<1x512xi1>
    %44 = vector.broadcast %43 : vector<1x512xi1> to vector<8x512xi1>
    %45 = vector.broadcast %cst_13 : f32 to vector<8x512xf32>
    %46 = arith.select %44, %42, %45 : vector<8x512xi1>, vector<8x512xf32>
    %c8 = arith.constant 8 : index
    %c0_14 = arith.constant 0 : index
    %47 = vector.load %arg7[%c8, %c0_14] : memref<72x512xf32, #tpu.memory_space<vmem>>, vector<8x512xf32>
    tpu.vector_store %arg7[%c8, %c0_14], %46 {strides = array<i32>} : memref<72x512xf32, #tpu.memory_space<vmem>>, vector<8x512xf32>,
    %c15_i32_15 = arith.constant 15 : i32
    %48 = tpu.dynamic_rotate %35 by %c15_i32_15 dim 1 : vector<8x512xf32>, i32 -> vector<8x512xf32>
    %cst_16 = arith.constant 0.000000e+00 : f32
    %49 = vector.shape_cast %18 : vector<1x512xi1> to vector<1x512xi1>
    %50 = vector.broadcast %49 : vector<1x512xi1> to vector<8x512xi1>
    %51 = vector.broadcast %cst_16 : f32 to vector<8x512xf32>
    %52 = arith.select %50, %48, %51 : vector<8x512xi1>, vector<8x512xf32>
    %c16 = arith.constant 16 : index
    %c0_17 = arith.constant 0 : index
    %53 = vector.load %arg7[%c16, %c0_17] : memref<72x512xf32, #tpu.memory_space<vmem>>, vector<8x512xf32>
    tpu.vector_store %arg7[%c16, %c0_17], %52 {strides = array<i32>} : memref<72x512xf32, #tpu.memory_space<vmem>>, vector<8x512xf32>,
    %c1_i32_18 = arith.constant 1 : i32
    %54 = tpu.dynamic_rotate %35 by %c1_i32_18 dim 1 : vector<8x512xf32>, i32 -> vector<8x512xf32>
    %cst_19 = arith.constant 0.000000e+00 : f32
    %55 = vector.shape_cast %20 : vector<1x512xi1> to vector<1x512xi1>
    %56 = vector.broadcast %55 : vector<1x512xi1> to vector<8x512xi1>
    %57 = vector.broadcast %cst_19 : f32 to vector<8x512xf32>
    %58 = arith.select %56, %54, %57 : vector<8x512xi1>, vector<8x512xf32>
    %c24 = arith.constant 24 : index
    %c0_20 = arith.constant 0 : index
    %59 = vector.load %arg7[%c24, %c0_20] : memref<72x512xf32, #tpu.memory_space<vmem>>, vector<8x512xf32>
    tpu.vector_store %arg7[%c24, %c0_20], %58 {strides = array<i32>} : memref<72x512xf32, #tpu.memory_space<vmem>>, vector<8x512xf32>,
    %c32 = arith.constant 32 : index
    %c0_21 = arith.constant 0 : index
    %60 = vector.load %arg7[%c32, %c0_21] : memref<72x512xf32, #tpu.memory_space<vmem>>, vector<8x512xf32>
    tpu.vector_store %arg7[%c32, %c0_21], %35 {strides = array<i32>} : memref<72x512xf32, #tpu.memory_space<vmem>>, vector<8x512xf32>,
    %c511_i32 = arith.constant 511 : i32
    %61 = tpu.dynamic_rotate %35 by %c511_i32 dim 1 : vector<8x512xf32>, i32 -> vector<8x512xf32>
    %cst_22 = arith.constant 0.000000e+00 : f32
    %62 = vector.shape_cast %22 : vector<1x512xi1> to vector<1x512xi1>
    %63 = vector.broadcast %62 : vector<1x512xi1> to vector<8x512xi1>
    %64 = vector.broadcast %cst_22 : f32 to vector<8x512xf32>
    %65 = arith.select %63, %61, %64 : vector<8x512xi1>, vector<8x512xf32>
    %c40 = arith.constant 40 : index
    %c0_23 = arith.constant 0 : index
    %66 = vector.load %arg7[%c40, %c0_23] : memref<72x512xf32, #tpu.memory_space<vmem>>, vector<8x512xf32>
    tpu.vector_store %arg7[%c40, %c0_23], %65 {strides = array<i32>} : memref<72x512xf32, #tpu.memory_space<vmem>>, vector<8x512xf32>,
    %c497_i32 = arith.constant 497 : i32
    %67 = tpu.dynamic_rotate %35 by %c497_i32 dim 1 : vector<8x512xf32>, i32 -> vector<8x512xf32>
    %cst_24 = arith.constant 0.000000e+00 : f32
    %68 = vector.shape_cast %27 : vector<1x512xi1> to vector<1x512xi1>
    %69 = vector.broadcast %68 : vector<1x512xi1> to vector<8x512xi1>
    %70 = vector.broadcast %cst_24 : f32 to vector<8x512xf32>
    %71 = arith.select %69, %67, %70 : vector<8x512xi1>, vector<8x512xf32>
    %c48 = arith.constant 48 : index
    %c0_25 = arith.constant 0 : index
    %72 = vector.load %arg7[%c48, %c0_25] : memref<72x512xf32, #tpu.memory_space<vmem>>, vector<8x512xf32>
    tpu.vector_store %arg7[%c48, %c0_25], %71 {strides = array<i32>} : memref<72x512xf32, #tpu.memory_space<vmem>>, vector<8x512xf32>,
    %c496_i32 = arith.constant 496 : i32
    %73 = tpu.dynamic_rotate %35 by %c496_i32 dim 1 : vector<8x512xf32>, i32 -> vector<8x512xf32>
    %cst_26 = arith.constant 0.000000e+00 : f32
    %74 = vector.shape_cast %29 : vector<1x512xi1> to vector<1x512xi1>
    %75 = vector.broadcast %74 : vector<1x512xi1> to vector<8x512xi1>
    %76 = vector.broadcast %cst_26 : f32 to vector<8x512xf32>
    %77 = arith.select %75, %73, %76 : vector<8x512xi1>, vector<8x512xf32>
    %c56 = arith.constant 56 : index
    %c0_27 = arith.constant 0 : index
    %78 = vector.load %arg7[%c56, %c0_27] : memref<72x512xf32, #tpu.memory_space<vmem>>, vector<8x512xf32>
    tpu.vector_store %arg7[%c56, %c0_27], %77 {strides = array<i32>} : memref<72x512xf32, #tpu.memory_space<vmem>>, vector<8x512xf32>,
    %c495_i32 = arith.constant 495 : i32
    %79 = tpu.dynamic_rotate %35 by %c495_i32 dim 1 : vector<8x512xf32>, i32 -> vector<8x512xf32>
    %cst_28 = arith.constant 0.000000e+00 : f32
    %80 = vector.shape_cast %34 : vector<1x512xi1> to vector<1x512xi1>
    %81 = vector.broadcast %80 : vector<1x512xi1> to vector<8x512xi1>
    %82 = vector.broadcast %cst_28 : f32 to vector<8x512xf32>
    %83 = arith.select %81, %79, %82 : vector<8x512xi1>, vector<8x512xf32>
    %c64 = arith.constant 64 : index
    %c0_29 = arith.constant 0 : index
    %84 = vector.load %arg7[%c64, %c0_29] : memref<72x512xf32, #tpu.memory_space<vmem>>, vector<8x512xf32>
    tpu.vector_store %arg7[%c64, %c0_29], %83 {strides = array<i32>} : memref<72x512xf32, #tpu.memory_space<vmem>>, vector<8x512xf32>,
    %c0_30 = arith.constant 0 : index
    %c0_31 = arith.constant 0 : index
    %85 = vector.load %arg2[%c0_30, %c0_31] : memref<16x72xf32, #tpu.memory_space<vmem>>, vector<16x72xf32>
    %c0_32 = arith.constant 0 : index
    %c0_33 = arith.constant 0 : index
    %86 = vector.load %arg7[%c0_32, %c0_33] : memref<72x512xf32, #tpu.memory_space<vmem>>, vector<72x512xf32>
    %cst_34 = arith.constant dense<0.000000e+00> : vector<16x512xf32>
    %87 = tpu.matmul %85, %86, %cst_34 {dimension_numbers = #tpu.dot_dimension_numbers<[1], [0], [0], [1], [0, 0, 1, 1], [], []>} : vector<16x72xf32>, vector<72x512xf32>, vector<16x512xf32> -> vector<16x512xf32>
    %88 = vector.extract_strided_slice %87 {offsets = [0, 0], sizes = [8, 512], strides = [1, 1]} : vector<16x512xf32> to vector<8x512xf32>
    %c0_35 = arith.constant 0 : index
    %c0_36 = arith.constant 0 : index
    %89 = vector.load %arg3[%c0_35, %c0_36] : memref<8x1xf32, #tpu.memory_space<vmem>>, vector<8x1xf32>
    %90 = vector.broadcast %89 : vector<8x1xf32> to vector<8x512xf32>
    %91 = arith.addf %88, %90 : vector<8x512xf32>
    %cst_37 = arith.constant 0.000000e+00 : f32
    %92 = vector.broadcast %cst_37 : f32 to vector<8x512xf32>
    %93 = arith.maximumf %91, %92 : vector<8x512xf32>
    %94 = vector.extract_strided_slice %87 {offsets = [8, 0], sizes = [8, 512], strides = [1, 1]} : vector<16x512xf32> to vector<8x512xf32>
    %c17_i32_38 = arith.constant 17 : i32
    %95 = tpu.dynamic_rotate %93 by %c17_i32_38 dim 1 : vector<8x512xf32>, i32 -> vector<8x512xf32>
    %cst_39 = arith.constant 0.000000e+00 : f32
    %96 = vector.shape_cast %11 : vector<1x512xi1> to vector<1x512xi1>
    %97 = vector.broadcast %96 : vector<1x512xi1> to vector<8x512xi1>
    %98 = vector.broadcast %cst_39 : f32 to vector<8x512xf32>
    %99 = arith.select %97, %95, %98 : vector<8x512xi1>, vector<8x512xf32>
    %c0_40 = arith.constant 0 : index
    %c0_41 = arith.constant 0 : index
    %100 = vector.load %arg8[%c0_40, %c0_41] : memref<72x512xf32, #tpu.memory_space<vmem>>, vector<8x512xf32>
    tpu.vector_store %arg8[%c0_40, %c0_41], %99 {strides = array<i32>} : memref<72x512xf32, #tpu.memory_space<vmem>>, vector<8x512xf32>,
    %c16_i32_42 = arith.constant 16 : i32
    %101 = tpu.dynamic_rotate %93 by %c16_i32_42 dim 1 : vector<8x512xf32>, i32 -> vector<8x512xf32>
    %cst_43 = arith.constant 0.000000e+00 : f32
    %102 = vector.shape_cast %13 : vector<1x512xi1> to vector<1x512xi1>
    %103 = vector.broadcast %102 : vector<1x512xi1> to vector<8x512xi1>
    %104 = vector.broadcast %cst_43 : f32 to vector<8x512xf32>
    %105 = arith.select %103, %101, %104 : vector<8x512xi1>, vector<8x512xf32>
    %c8_44 = arith.constant 8 : index
    %c0_45 = arith.constant 0 : index
    %106 = vector.load %arg8[%c8_44, %c0_45] : memref<72x512xf32, #tpu.memory_space<vmem>>, vector<8x512xf32>
    tpu.vector_store %arg8[%c8_44, %c0_45], %105 {strides = array<i32>} : memref<72x512xf32, #tpu.memory_space<vmem>>, vector<8x512xf32>,
    %c15_i32_46 = arith.constant 15 : i32
    %107 = tpu.dynamic_rotate %93 by %c15_i32_46 dim 1 : vector<8x512xf32>, i32 -> vector<8x512xf32>
    %cst_47 = arith.constant 0.000000e+00 : f32
    %108 = vector.shape_cast %18 : vector<1x512xi1> to vector<1x512xi1>
    %109 = vector.broadcast %108 : vector<1x512xi1> to vector<8x512xi1>
    %110 = vector.broadcast %cst_47 : f32 to vector<8x512xf32>
    %111 = arith.select %109, %107, %110 : vector<8x512xi1>, vector<8x512xf32>
    %c16_48 = arith.constant 16 : index
    %c0_49 = arith.constant 0 : index
    %112 = vector.load %arg8[%c16_48, %c0_49] : memref<72x512xf32, #tpu.memory_space<vmem>>, vector<8x512xf32>
    tpu.vector_store %arg8[%c16_48, %c0_49], %111 {strides = array<i32>} : memref<72x512xf32, #tpu.memory_space<vmem>>, vector<8x512xf32>,
    %c1_i32_50 = arith.constant 1 : i32
    %113 = tpu.dynamic_rotate %93 by %c1_i32_50 dim 1 : vector<8x512xf32>, i32 -> vector<8x512xf32>
    %cst_51 = arith.constant 0.000000e+00 : f32
    %114 = vector.shape_cast %20 : vector<1x512xi1> to vector<1x512xi1>
    %115 = vector.broadcast %114 : vector<1x512xi1> to vector<8x512xi1>
    %116 = vector.broadcast %cst_51 : f32 to vector<8x512xf32>
    %117 = arith.select %115, %113, %116 : vector<8x512xi1>, vector<8x512xf32>
    %c24_52 = arith.constant 24 : index
    %c0_53 = arith.constant 0 : index
    %118 = vector.load %arg8[%c24_52, %c0_53] : memref<72x512xf32, #tpu.memory_space<vmem>>, vector<8x512xf32>
    tpu.vector_store %arg8[%c24_52, %c0_53], %117 {strides = array<i32>} : memref<72x512xf32, #tpu.memory_space<vmem>>, vector<8x512xf32>,
    %c32_54 = arith.constant 32 : index
    %c0_55 = arith.constant 0 : index
    %119 = vector.load %arg8[%c32_54, %c0_55] : memref<72x512xf32, #tpu.memory_space<vmem>>, vector<8x512xf32>
    tpu.vector_store %arg8[%c32_54, %c0_55], %93 {strides = array<i32>} : memref<72x512xf32, #tpu.memory_space<vmem>>, vector<8x512xf32>,
    %c511_i32_56 = arith.constant 511 : i32
    %120 = tpu.dynamic_rotate %93 by %c511_i32_56 dim 1 : vector<8x512xf32>, i32 -> vector<8x512xf32>
    %cst_57 = arith.constant 0.000000e+00 : f32
    %121 = vector.shape_cast %22 : vector<1x512xi1> to vector<1x512xi1>
    %122 = vector.broadcast %121 : vector<1x512xi1> to vector<8x512xi1>
    %123 = vector.broadcast %cst_57 : f32 to vector<8x512xf32>
    %124 = arith.select %122, %120, %123 : vector<8x512xi1>, vector<8x512xf32>
    %c40_58 = arith.constant 40 : index
    %c0_59 = arith.constant 0 : index
    %125 = vector.load %arg8[%c40_58, %c0_59] : memref<72x512xf32, #tpu.memory_space<vmem>>, vector<8x512xf32>
    tpu.vector_store %arg8[%c40_58, %c0_59], %124 {strides = array<i32>} : memref<72x512xf32, #tpu.memory_space<vmem>>, vector<8x512xf32>,
    %c497_i32_60 = arith.constant 497 : i32
    %126 = tpu.dynamic_rotate %93 by %c497_i32_60 dim 1 : vector<8x512xf32>, i32 -> vector<8x512xf32>
    %cst_61 = arith.constant 0.000000e+00 : f32
    %127 = vector.shape_cast %27 : vector<1x512xi1> to vector<1x512xi1>
    %128 = vector.broadcast %127 : vector<1x512xi1> to vector<8x512xi1>
    %129 = vector.broadcast %cst_61 : f32 to vector<8x512xf32>
    %130 = arith.select %128, %126, %129 : vector<8x512xi1>, vector<8x512xf32>
    %c48_62 = arith.constant 48 : index
    %c0_63 = arith.constant 0 : index
    %131 = vector.load %arg8[%c48_62, %c0_63] : memref<72x512xf32, #tpu.memory_space<vmem>>, vector<8x512xf32>
    tpu.vector_store %arg8[%c48_62, %c0_63], %130 {strides = array<i32>} : memref<72x512xf32, #tpu.memory_space<vmem>>, vector<8x512xf32>,
    %c496_i32_64 = arith.constant 496 : i32
    %132 = tpu.dynamic_rotate %93 by %c496_i32_64 dim 1 : vector<8x512xf32>, i32 -> vector<8x512xf32>
    %cst_65 = arith.constant 0.000000e+00 : f32
    %133 = vector.shape_cast %29 : vector<1x512xi1> to vector<1x512xi1>
    %134 = vector.broadcast %133 : vector<1x512xi1> to vector<8x512xi1>
    %135 = vector.broadcast %cst_65 : f32 to vector<8x512xf32>
    %136 = arith.select %134, %132, %135 : vector<8x512xi1>, vector<8x512xf32>
    %c56_66 = arith.constant 56 : index
    %c0_67 = arith.constant 0 : index
    %137 = vector.load %arg8[%c56_66, %c0_67] : memref<72x512xf32, #tpu.memory_space<vmem>>, vector<8x512xf32>
    tpu.vector_store %arg8[%c56_66, %c0_67], %136 {strides = array<i32>} : memref<72x512xf32, #tpu.memory_space<vmem>>, vector<8x512xf32>,
    %c495_i32_68 = arith.constant 495 : i32
    %138 = tpu.dynamic_rotate %93 by %c495_i32_68 dim 1 : vector<8x512xf32>, i32 -> vector<8x512xf32>
    %cst_69 = arith.constant 0.000000e+00 : f32
    %139 = vector.shape_cast %34 : vector<1x512xi1> to vector<1x512xi1>
    %140 = vector.broadcast %139 : vector<1x512xi1> to vector<8x512xi1>
    %141 = vector.broadcast %cst_69 : f32 to vector<8x512xf32>
    %142 = arith.select %140, %138, %141 : vector<8x512xi1>, vector<8x512xf32>
    %c64_70 = arith.constant 64 : index
    %c0_71 = arith.constant 0 : index
    %143 = vector.load %arg8[%c64_70, %c0_71] : memref<72x512xf32, #tpu.memory_space<vmem>>, vector<8x512xf32>
    tpu.vector_store %arg8[%c64_70, %c0_71], %142 {strides = array<i32>} : memref<72x512xf32, #tpu.memory_space<vmem>>, vector<8x512xf32>,
    %c0_72 = arith.constant 0 : index
    %c0_73 = arith.constant 0 : index
    %144 = vector.load %arg4[%c0_72, %c0_73] : memref<8x72xf32, #tpu.memory_space<vmem>>, vector<8x72xf32>
    %c0_74 = arith.constant 0 : index
    %c0_75 = arith.constant 0 : index
    %145 = vector.load %arg8[%c0_74, %c0_75] : memref<72x512xf32, #tpu.memory_space<vmem>>, vector<72x512xf32>
    %cst_76 = arith.constant dense<0.000000e+00> : vector<8x512xf32>
    %146 = tpu.matmul %144, %145, %cst_76 {dimension_numbers = #tpu.dot_dimension_numbers<[1], [0], [0], [1], [0, 0, 1, 1], [], []>} : vector<8x72xf32>, vector<72x512xf32>, vector<8x512xf32> -> vector<8x512xf32>
    %147 = arith.addf %146, %94 : vector<8x512xf32>
    %c0_77 = arith.constant 0 : index
    %c0_78 = arith.constant 0 : index
    %148 = vector.load %arg5[%c0_77, %c0_78] : memref<8x1xf32, #tpu.memory_space<vmem>>, vector<8x1xf32>
    %149 = vector.broadcast %148 : vector<8x1xf32> to vector<8x512xf32>
    %150 = arith.addf %147, %149 : vector<8x512xf32>
    %cst_79 = arith.constant 0.000000e+00 : f32
    %151 = vector.broadcast %cst_79 : f32 to vector<8x512xf32>
    %152 = arith.maximumf %150, %151 : vector<8x512xf32>
    %c0_80 = arith.constant 0 : index
    %c0_81 = arith.constant 0 : index
    %153 = vector.load %arg6[%c0_80, %c0_81] : memref<8x512xf32, #tpu.memory_space<vmem>>, vector<8x512xf32>
    tpu.vector_store %arg6[%c0_80, %c0_81], %152 {strides = array<i32>} : memref<8x512xf32, #tpu.memory_space<vmem>>, vector<8x512xf32>,
    return
  }
  func.func @transform_0(%arg0: i32) -> (i32, i32) {
    %c0_i32 = arith.constant 0 : i32
    %c0_i32_0 = arith.constant 0 : i32
    %c0_i32_1 = arith.constant 0 : i32
    return %c0_i32, %c0_i32_0 : i32, i32
  }
  func.func @transform_1(%arg0: i32) -> (i32, i32) {
    %c0_i32 = arith.constant 0 : i32
    %c0_i32_0 = arith.constant 0 : i32
    %c0_i32_1 = arith.constant 0 : i32
    return %c0_i32, %c0_i32_0 : i32, i32
  }
  func.func @transform_2(%arg0: i32) -> (i32, i32) {
    %c0_i32 = arith.constant 0 : i32
    %c0_i32_0 = arith.constant 0 : i32
    %c0_i32_1 = arith.constant 0 : i32
    return %c0_i32, %c0_i32_0 : i32, i32
  }
  func.func @transform_3(%arg0: i32) -> (i32, i32) {
    %c0_i32 = arith.constant 0 : i32
    %c0_i32_0 = arith.constant 0 : i32
    %c0_i32_1 = arith.constant 0 : i32
    return %c0_i32, %c0_i32_0 : i32, i32
  }
  func.func @transform_4(%arg0: i32) -> (i32, i32) {
    %c0_i32 = arith.constant 0 : i32
    %c0_i32_0 = arith.constant 0 : i32
    %c0_i32_1 = arith.constant 0 : i32
    return %c0_i32, %c0_i32_0 : i32, i32
  }
  func.func @transform_5(%arg0: i32) -> (i32, i32) {
    %c0_i32 = arith.constant 0 : i32
    %c0_i32_0 = arith.constant 0 : i32
    %c0_i32_1 = arith.constant 0 : i32
    return %c0_i32, %c0_i32_0 : i32, i32
  }
}

</mosaic_0001>

<bundles_post_ra>
// kernel: tpu_custom_call.1
= control target key start
LH: loop header
LB: loop body
LE: loop exit
PB: predicated region body
PF: predicated region fallthrough
CT: control target
= control target key end

     0   :  { %10 = vsyncpa [#allocation5], 0  ;;  %s1651_s0 = inlined_call_operand.hbm [shape: f32[8,512], index: 0, kind: input, shape index: {}]   ;;  %s1652_s1 = inlined_call_operand.vmem [shape: f32[16,72], index: 1, kind: input, shape index: {}]   ;;  %s1653_s2 = inlined_call_operand.vmem [shape: f32[8,1], index: 2, kind: input, shape index: {}]   ;;  %s1654_s3 = inlined_call_operand.hbm [shape: f32[8,72], index: 3, kind: input, shape index: {}]   ;;  %s1655_s4 = inlined_call_operand.vmem [shape: f32[8,1], index: 4, kind: input, shape index: {}]   ;;  %s1656_s5 = inlined_call_operand.hbm [shape: f32[8,512], index: 5, kind: output, shape index: {}]  }
   0x1   :  { %11 = vsyncpa [#allocation8], 0 }
   0x2   :  { %12 = vsyncpa [#allocation6], 0  ;;  %s18_s20 = sshll.u32 %s1651_s0, 4  ;;  %s977_s21 = smov [#allocation4]   ;;  %s19_s20 = int_to_ptr.hbm [resolvable:$true] %s18_s20 }
   0x3   :  { %s20_s22 = sshll.u32 %s977_s21, 4  ;;  %s33_s25 = sshll.u32 %s1654_s3, 4  ;;  %s21_s22 = int_to_ptr.vmem [resolvable:$true] %s20_s22  ;;  %s34_s25 = int_to_ptr.hbm [resolvable:$true] %s33_s25 }
   0x4   :  { %23 = dma.hbm_to_vmem [thread:$0]  %s19_s20, 512, %s21_s22, [#allocation5]  }
   0x5   :  { %s978_s26 = smov [#allocation7]  }
   0x6   :  { %s35_s27 = sshll.u32 %s978_s26, 4  ;;  %s36_s27 = int_to_ptr.vmem [resolvable:$true] %s35_s27 }
   0x7   :  { %38 = dma.hbm_to_vmem [thread:$0]  %s34_s25, 128, %s36_s27, [#allocation8]  }
   0x8   :  { %971 = dma.done.wait [#allocation5], 512  }
   0x9   :  { %972 = vsyncadd [#allocation5], 4294966784 }
   0xa   :  { %973 = dma.done.wait [#allocation8], 128  }
   0xb   :  { %974 = vsyncadd [#allocation8], 4294967168  ;;  %v1025_v0 = vld [vmem:[#allocation4 + $0x18] sm:$0xff]  ;;  %v1027_v1 = vld [vmem:[#allocation4 + $0x10] sm:$0xff]  ;;  %s979_s0 = smov 111   ;;  %s980_s3 = smov 112   ;;  %v49_v4 = vlaneseq }
   0xc   :  { %v1029_v2 = vld [vmem:[#allocation4] sm:$0xff]  ;;  %315 = vrot.lane.b32.xlu1 %v1025_v0, %s979_s0  ;;  %284 = vrot.lane.b32.xlu2 %v1027_v1, %s980_s3  ;;  %s981_s28 = smov 113   ;;  %s982_s29 = smov 127   ;;  %v1055_v3 = vld [vmem:[#allocation4 + $0x8] sm:$0xff]  ;;  %v1693_v28 = vmov 0 }
   0xd   :  { %309 = vrot.lane.b32.xlu0 %v1029_v2, %s979_s0  ;;  %s983_s30 = smov 1   ;;  %s984_s6 = smov 15   ;;  %v1097_v5 = vand.u32 127, %v49_v4  ;;  %v1710_v4 = vmov 0  ;;  %v339_v30 = vld [vmem:[%s1652_s1 + $0x8] sm:$0xff] }
   0xe   :  { %s985_s7 = smov 16   ;;  %s986_s8 = smov 17  }
   0xf   :  { %v53_v7 = vadd.s32 384, %v1097_v5  ;;  %v52_v12 = vadd.s32 256, %v1097_v5  ;;  %vm1664_vm2 = vcmp.lt.s32.totalorder %v1097_v5, 111  ;;  %vm1665_vm7 = vcmp.lt.s32.totalorder %v1097_v5, 112  ;;  %s798_s18 = sshll.u32 %s1656_s5, 4  ;;  %s799_s18 = int_to_ptr.hbm [resolvable:$true] %s798_s18 }
  0x10   :  { %vm1668_vm10 = vcmp.lt.s32.totalorder %v1097_v5, 113  ;;  %v51_v33 = vadd.s32 128, %v1097_v5  ;;  %v54_v35 = vand.u32 255, %v1097_v5  ;;  %vm1659_vm13 = vcmp.lt.s32.totalorder %v1097_v5, 127 }
  0x11   :  { %v57_v8 = vand.u32 255, %v53_v7  ;;  %v56_v13 = vand.u32 255, %v52_v12  ;;  %v475_v12 = vld [vmem:[%s1653_s2] sm:$0xff] }
  0x12   :  { %v55_v36 = vand.u32 255, %v51_v33  ;;  %v1184_v39 = vand.u32 15, %v54_v35  ;;  %v1186_v40 = vshra.s32 %v54_v35, 4  ;;  %v1726_v33 = vmov 0 }
  0x13   :  { %v1102_v10 = vand.u32 15, %v57_v8  ;;  %v1104_v11 = vshra.s32 %v57_v8, 4  ;;  %v1118_v17 = vand.u32 15, %v56_v13  ;;  %v1120_v18 = vshra.s32 %v56_v13, 4 }
  0x14   :  { %286 = vrot.lane.b32.xlu2 %v1025_v0, %s980_s3  ;;  %280 = vrot.lane.b32.xlu1 %v1029_v2, %s980_s3  ;;  %v1193_v43 = vand.u32 15, %v55_v36  ;;  %v1195_v44 = vshra.s32 %v55_v36, 4  ;;  %vm1671_vm14 = vcmp.le.s32.totalorder %v1184_v39, 14  ;;  %vm1667_vm15 = vcmp.le.s32.totalorder %v1186_v40, 14 }
  0x15   :  { %313 = vrot.lane.b32.xlu0 %v1027_v1, %s979_s0  ;;  %vm1661_vm0 = vcmp.le.s32.totalorder %v1102_v10, 14  ;;  %vm1658_vm1 = vcmp.le.s32.totalorder %v1104_v11, 14  ;;  %vm1660_vm4 = vcmp.le.s32.totalorder %v1118_v17, 14  ;;  %vm1657_vm5 = vcmp.le.s32.totalorder %v1120_v18, 14 }
  0x16   :  { %vm1114_vm3 = vmand %vm1658_vm1, %vm1661_vm0  ;;  %vm1675_vm8 = vcmp.ge.s32.totalorder %v1118_v17, 1  ;;  %vm1662_vm9 = vcmp.ge.s32.totalorder %v1102_v10, 1  ;;  %v987_v13 = vmov 0  }
  0x17   :  { %vm1132_vm6 = vmand %vm1657_vm5, %vm1660_vm4  ;;  %897 = vset.pattern.permute.xlu2 %v987_v13  ;;  %898 = vset.pattern.permute.xlu0 %v987_v13  ;;  %v773_v13 = vld [vmem:[%s1655_s4] sm:$0xff] }
  0x18   :  { %vm1157_vm11 = vmand %vm1657_vm5, %vm1675_vm8 }
  0x19   :  { %v1694_v28 = vsel %vm1157_vm11, 4294967295, %v1693_v28  ;;  %vm1165_vm12 = vmand %vm1658_vm1, %vm1662_vm9  ;;  %vm1669_vm9 = vcmp.ge.s32.totalorder %v1193_v43, 1 }
  0x1c   :  { %257 = vrot.lane.b32.xlu2 %v1025_v0, %s981_s28  ;;  %255 = vrot.lane.b32.xlu1 %v1027_v1, %s981_s28 }
  0x1d   :  { %251 = vrot.lane.b32.xlu0 %v1029_v2, %s981_s28 }
  0x24   :  { %228 = vrot.lane.b32.xlu2 %v1025_v0, %s982_s29  ;;  %226 = vrot.lane.b32.xlu1 %v1027_v1, %s982_s29 }
  0x25   :  { %222 = vrot.lane.b32.xlu0 %v1029_v2, %s982_s29 }
  0x2c   :  { %191 = vrot.lane.b32.xlu2 %v1055_v3, %s983_s30  ;;  %282 = vrot.lane.b32.xlu1 %v1055_v3, %s980_s3 }
  0x2d   :  { %311 = vrot.lane.b32.xlu0 %v1055_v3, %s979_s0 }
  0x34   :  { %253 = vrot.lane.b32.xlu2 %v1055_v3, %s981_s28  ;;  %195 = vrot.lane.b32.xlu1 %v1025_v0, %s983_s30 }
  0x35   :  { %193 = vrot.lane.b32.xlu0 %v1027_v1, %s983_s30 }
  0x3c   :  { %166 = vrot.lane.b32.xlu2 %v1025_v0, %s984_s6  ;;  %164 = vrot.lane.b32.xlu1 %v1027_v1, %s984_s6 }
  0x3d   :  { %162 = vrot.lane.b32.xlu0 %v1055_v3, %s984_s6 }
  0x44   :  { %135 = vrot.lane.b32.xlu2 %v1027_v1, %s985_s7  ;;  %133 = vrot.lane.b32.xlu1 %v1055_v3, %s985_s7 }
  0x45   :  { %224 = vrot.lane.b32.xlu0 %v1055_v3, %s982_s29 }
  0x4c   :  { %106 = vrot.lane.b32.xlu2 %v1027_v1, %s986_s8  ;;  %104 = vrot.lane.b32.xlu1 %v1055_v3, %s986_s8 }
  0x4d   :  { %137 = vrot.lane.b32.xlu0 %v1025_v0, %s985_s7 }
  0x54   :  { %160 = vrot.lane.b32.xlu2 %v1029_v2, %s984_s6  ;;  %189 = vrot.lane.b32.xlu1 %v1029_v2, %s983_s30 }
  0x55   :  { %108 = vrot.lane.b32.xlu0 %v1025_v0, %s986_s8 }
  0x5c   :  { %102 = vrot.lane.b32.xlu1 %v1029_v2, %s986_s8  ;;  %478 = vperm.xlu2 %897, %v475_v12  }
  0x5d   :  { %131 = vrot.lane.b32.xlu0 %v1029_v2, %s985_s7 }
  0x66   :  { %v1099_v6 = vpop.permute.xlu2 %284 }
  0x6e   :  { %v287_v9 = vpop.permute.xlu2 %286 }
  0x6f   :  { %v289_v27 = vsel %vm1665_vm7, %v1099_v6, %v287_v9 }
  0x76   :  { %v258_v19 = vpop.permute.xlu2 %257 }
  0x7e   :  { %v316_v14 = vpop.permute.xlu1 %315  ;;  %v229_v26 = vpop.permute.xlu2 %228 }
  0x7f   :  { %v310_v16 = vpop.permute.xlu0 %309 }
  0x80   :  { %v321_v20 = vsel %vm1664_vm2, %v316_v14, %v310_v16 }
  0x81   :  { %845 = vmatpush.msk.msra.mxu3 %vm1114_vm3, %v321_v20 }
  0x86   :  { %v281_v21 = vpop.permute.xlu1 %280  ;;  %v1179_v37 = vpop.permute.xlu2 %191 }
  0x87   :  { %v314_v23 = vpop.permute.xlu0 %313  ;;  %v292_v24 = vsel %vm1665_vm7, %v287_v9, %v281_v21 }
  0x88   :  { %v318_v25 = vsel %vm1664_vm2, %v314_v23, %v316_v14  ;;  %846 = vmatpush.msk.msra.mxu3 %vm1658_vm1, %v292_v24  ;;  %vm1666_vm1 = vcmp.le.s32.totalorder %v1195_v44, 14  ;;  %v1717_v24 = vmov 0 }
  0x89   :  { %837 = vmatpush.msk.msra.mxu2 %vm1132_vm6, %v318_v25 }
  0x8b   :  { %838 = vmatpush.msk.msra.mxu2 %vm1657_vm5, %v289_v27  ;;  %vm1663_vm5 = vcmp.le.s32.totalorder %v1193_v43, 14 }
  0x8e   :  { %v256_v29 = vpop.permute.xlu1 %255  ;;  %v254_v47 = vpop.permute.xlu2 %253 }
  0x8f   :  { %v252_v31 = vpop.permute.xlu0 %251  ;;  %v260_v32 = vsel %vm1668_vm10, %v256_v29, %v258_v19  ;;  %v261_v58 = vsel %vm1668_vm10, %v254_v47, %v256_v29  ;;  %v1723_v29 = vmov 0 }
  0x90   :  { %v263_v34 = vsel %vm1668_vm10, %v258_v19, %v252_v31  ;;  %839 = vmatpush.msk.msra.mxu2 %vm1157_vm11, %v260_v32  ;;  %v262_v57 = vsel %vm1668_vm10, %v252_v31, %v254_v47  ;;  %vm1677_vm10 = vcmp.ge.s32.totalorder %v1120_v18, 1 }
  0x91   :  { %847 = vmatpush.msk.msra.mxu3 %vm1165_vm12, %v263_v34 }
  0x96   :  { %v1182_v38 = vpop.permute.xlu1 %226  ;;  %v167_v61 = vpop.permute.xlu2 %166 }
  0x97   :  { %v1188_v41 = vpop.permute.xlu0 %222  ;;  %v231_v42 = vsel %vm1659_vm13, %v1182_v38, %v229_v26 }
  0x98   :  { %v234_v45 = vsel %vm1659_vm13, %v229_v26, %v1188_v41  ;;  %840 = vmatpush.msk.msra.mxu2 %vm1660_vm4, %v231_v42  ;;  %vm1214_vm13 = vmand %vm1667_vm15, %vm1671_vm14  ;;  %v338_v26 = vld [vmem:[%s1652_s1] sm:$0xff]  ;;  %s988_s1 = smov [#allocation9]  }
  0x99   :  { %848 = vmatpush.msk.msra.mxu3 %vm1661_vm0, %v234_v45  ;;  %vm1222_vm4 = vmand %vm1666_vm1, %vm1663_vm5  ;;  %vm1670_vm0 = vcmp.ge.s32.totalorder %v1184_v39, 1  ;;  %s796_s15 = sshll.u32 %s988_s1, 4  ;;  %s797_s15 = int_to_ptr.vmem [resolvable:$true] %s796_s15 }
  0x9a   :  { %440 = vmatpush.msra.mxu2 %v1027_v1  ;;  %vm1240_vm5 = vmand %vm1667_vm15, %vm1670_vm0  ;;  %vm1706_vm0 = vcmp.le.s32.totalorder %v1102_v10, 14 }
  0x9b   :  { %463 = vmatpush.msra.mxu3 %v1025_v0  ;;  %v1707_v0 = vmov 0 }
  0x9e   :  { %v283_v48 = vpop.permute.xlu1 %282  ;;  %v136_v9 = vpop.permute.xlu2 %135 }
  0x9f   :  { %v312_v50 = vpop.permute.xlu0 %311  ;;  %v291_v54 = vsel %vm1665_vm7, %v281_v21, %v283_v48  ;;  %v290_v55 = vsel %vm1665_vm7, %v283_v48, %v1099_v6  ;;  %vm1672_vm7 = vcmp.lt.s32.totalorder %v1097_v5, 1 }
  0xa0   :  { %v320_v51 = vsel %vm1664_vm2, %v310_v16, %v312_v50  ;;  %v319_v52 = vsel %vm1664_vm2, %v312_v50, %v314_v23  ;;  %vm1253_vm2 = vmand %vm1666_vm1, %vm1669_vm9  ;;  %vm1673_vm9 = vcmp.lt.s32.totalorder %v1097_v5, 15 }
  0xa1   :  { %821 = vmatpush.msk.msra.mxu0 %vm1214_vm13, %v320_v51  ;;  %829 = vmatpush.msk.msra.mxu1 %vm1222_vm4, %v319_v52 }
  0xa3   :  { %822 = vmatpush.msk.msra.mxu0 %vm1667_vm15, %v291_v54  ;;  %830 = vmatpush.msk.msra.mxu1 %vm1666_vm1, %v290_v55  ;;  %vm1705_vm1 = vcmp.ge.s32.totalorder %v1102_v10, 1  ;;  %vm1674_vm15 = vcmp.ge.s32.totalorder %v1104_v11, 1 }
  0xa4   :  { %vm1286_vm14 = vmand %vm1674_vm15, %vm1706_vm0  ;;  %vm1676_vm0 = vcmp.lt.s32.totalorder %v1097_v5, 16  ;;  %vm1714_vm15 = vcmp.le.s32.totalorder %v1184_v39, 14 }
  0xa5   :  { %823 = vmatpush.msk.msra.mxu0 %vm1240_vm5, %v262_v57  ;;  %831 = vmatpush.msk.msra.mxu1 %vm1253_vm2, %v261_v58  ;;  %v1708_v0 = vsel %vm1286_vm14, 4294967295, %v1707_v0 }
  0xa6   :  { %v196_v59 = vpop.permute.xlu1 %195  ;;  %v107_v23 = vpop.permute.xlu2 %106 }
  0xa7   :  { %v194_v60 = vpop.permute.xlu0 %193 }
  0xa8   :  { %v199_v62 = vsel %vm1672_vm7, %v1179_v37, %v194_v60  ;;  %v198_v63 = vsel %vm1672_vm7, %v194_v60, %v196_v59  ;;  %vm1709_vm7 = vcmp.le.s32.totalorder %v1118_v17, 14 }
  0xa9   :  { %841 = vmatpush.msk.msra.mxu2 %vm1675_vm8, %v199_v62  ;;  %849 = vmatpush.msk.msra.mxu3 %vm1705_vm1, %v198_v63  ;;  %vm1294_vm1 = vmand %vm1677_vm10, %vm1709_vm7  ;;  %vm1712_vm7 = vcmp.lt.s32.totalorder %v1097_v5, 127  ;;  %vm1715_vm8 = vcmp.le.s32.totalorder %v1193_v43, 14 }
  0xaa   :  { %v1711_v4 = vsel %vm1294_vm1, 4294967295, %v1710_v4 }
  0xae   :  { %v165_v1 = vpop.permute.xlu1 %164  ;;  %v161_v31 = vpop.permute.xlu2 %160 }
  0xaf   :  { %v163_v6 = vpop.permute.xlu0 %162  ;;  %v169_v7 = vsel %vm1673_vm9, %v165_v1, %v167_v61 }
  0xb0   :  { %v170_v8 = vsel %vm1673_vm9, %v163_v6, %v165_v1  ;;  %850 = vmatpush.msk.msra.mxu3 %vm1286_vm14, %v169_v7  ;;  %vm1713_vm9 = vmmov %vm1712_vm7  ;;  %vm1685_vm14 = vcmp.ge.s32.totalorder %v1195_v44, 1 }
  0xb1   :  { %842 = vmatpush.msk.msra.mxu2 %vm1294_vm1, %v170_v8  ;;  %vm1721_vm1 = vcmp.ge.s32.totalorder %v1102_v10, 1 }
  0xb6   :  { %v134_v14 = vpop.permute.xlu1 %133  ;;  %v479_v57 = vpop.permute.xlu2 %478 }
  0xb7   :  { %v225_v16 = vpop.permute.xlu0 %224  ;;  %v141_v19 = vsel %vm1676_vm0, %v134_v14, %v136_v9  ;;  %vm1716_vm0 = vcmp.ge.s32.totalorder %v1118_v17, 1 }
  0xb8   :  { %v233_v20 = vsel %vm1712_vm7, %v1188_v41, %v225_v16  ;;  %v232_v21 = vsel %vm1713_vm9, %v225_v16, %v1182_v38  ;;  %843 = vmatpush.msk.msra.mxu2 %vm1677_vm10, %v141_v19  ;;  %vm1681_vm7 = vcmp.lt.s32.totalorder %v1097_v5, 17  ;;  %vm1331_vm9 = vmand %vm1677_vm10, %vm1716_vm0  ;;  %vm1720_vm0 = vcmp.ge.s32.totalorder %v1104_v11, 1 }
  0xb9   :  { %824 = vmatpush.msk.msra.mxu0 %vm1714_vm15, %v233_v20  ;;  %832 = vmatpush.msk.msra.mxu1 %vm1715_vm8, %v232_v21  ;;  %v1718_v24 = vsel %vm1331_vm9, 4294967295, %v1717_v24  ;;  %vm1682_vm8 = vcmask 588800   ;;  %vm1719_vm15 = vcmp.lt.s32.totalorder %v1097_v5, 16  ;;  %vm1684_vm10 = vcmp.ge.s32.totalorder %v1186_v40, 1  ;;  %vm1722_vm11 = vmmov %vm1720_vm0 }
  0xba   :  { %v1731_v38 = vmov 0 }
  0xbb   :  { %394 = vmatpush.msra.mxu0 %v1029_v2  ;;  %417 = vmatpush.msra.mxu1 %v1055_v3 }
  0xbe   :  { %v105_v25 = vpop.permute.xlu1 %104 }
  0xbf   :  { %v138_v2 = vpop.permute.xlu0 %137  ;;  %v112_v3 = vsel %vm1681_vm7, %v105_v25, %v107_v23  ;;  %vm1353_vm7 = vmand %vm1722_vm11, %vm1721_vm1  ;;  %vm1730_vm1 = vcmp.le.s32.totalorder %v1193_v43, 14 }
  0xc0   :  { %v140_v27 = vsel %vm1719_vm15, %v136_v9, %v138_v2  ;;  %844 = vmatpush.msk.msra.mxu2 %vm1331_vm9, %v112_v3  ;;  %v1724_v29 = vsel %vm1353_vm7, 4294967295, %v1723_v29  ;;  %vm1725_vm15 = vcmp.le.s32.totalorder %v1184_v39, 14  ;;  %vm1374_vm9 = vmand %vm1685_vm14, %vm1730_vm1 }
  0xc1   :  { %851 = vmatpush.msk.msra.mxu3 %vm1720_vm0, %v140_v27  ;;  %813 = vmatmul.msk.f32.vlgmr.msra.gmra.mxu2 %vm1682_vm8, %v338_v26  ;;  %vm1361_vm0 = vmand %vm1684_vm10, %vm1725_vm15  ;;  %vm1728_vm8 = vcmp.lt.s32.totalorder %v1097_v5, 1  ;;  %v1732_v38 = vsel %vm1374_vm9, 4294967295, %v1731_v38  ;;  %vm1733_vm15 = vcmp.ge.s32.totalorder %v1184_v39, 1  ;;  %vm1734_vm10 = vcmp.ge.s32.totalorder %v1193_v43, 1 }
  0xc2   :  { %v1727_v33 = vsel %vm1361_vm0, 4294967295, %v1726_v33  ;;  %vm1729_vm11 = vmmov %vm1728_vm8 }
  0xc6   :  { %v190_v32 = vpop.permute.xlu1 %189 }
  0xc7   :  { %v109_v34 = vpop.permute.xlu0 %108  ;;  %v201_v35 = vsel %vm1728_vm8, %v196_v59, %v190_v32  ;;  %v200_v36 = vsel %vm1729_vm11, %v190_v32, %v1179_v37  ;;  %vm1735_vm8 = vcmp.lt.s32.totalorder %v1097_v5, 17  ;;  %vm1736_vm11 = vcmp.lt.s32.totalorder %v1097_v5, 15 }
  0xc8   :  { %825 = vmatpush.msk.msra.mxu0 %vm1733_vm15, %v201_v35  ;;  %833 = vmatpush.msk.msra.mxu1 %vm1734_vm10, %v200_v36  ;;  %v111_v41 = vsel %vm1735_vm8, %v107_v23, %v109_v34  ;;  %v172_v37 = vsel %vm1736_vm11, %v167_v61, %v161_v31  ;;  %vm1737_vm1 = vmmov %vm1736_vm11  ;;  %vm1738_vm15 = vcmask 588800   ;;  %vm1739_vm10 = vcmp.ge.s32.totalorder %v1184_v39, 1 }
  0xc9   :  { %852 = vmatpush.msk.msra.mxu3 %vm1353_vm7, %v111_v41  ;;  %v171_v42 = vsel %vm1737_vm1, %v161_v31, %v163_v6  ;;  %vm1740_vm8 = vcmp.ge.s32.totalorder %v1186_v40, 1  ;;  %vm1743_vm11 = vcmp.lt.s32.totalorder %v1097_v5, 16 }
  0xca   :  { %826 = vmatpush.msk.msra.mxu0 %vm1361_vm0, %v172_v37  ;;  %834 = vmatpush.msk.msra.mxu1 %vm1374_vm9, %v171_v42  ;;  %vm1399_vm14 = vmand %vm1740_vm8, %vm1739_vm10  ;;  %vm1745_vm9 = vcmp.ge.s32.totalorder %v1193_v43, 1 }
  0xcb   :  { %815 = vmatmul.msk.f32.vlgmr.msra.gmra.mxu3 %vm1738_vm15, %v338_v26  ;;  %vm1744_vm1 = vmmov %vm1743_vm11  ;;  %vm1746_vm15 = vcmp.ge.s32.totalorder %v1195_v44, 1 }
  0xcc   :  { %vm1411_vm0 = vmand %vm1746_vm15, %vm1745_vm9  ;;  %vm1753_vm9 = vcmask 588800  }
  0xcd   :  { %vm1749_vm7 = vmmov %vm1740_vm8  ;;  %vm1751_vm8 = vcmp.lt.s32.totalorder %v1097_v5, 17 }
  0xce   :  { %v103_v45 = vpop.permute.xlu1 %102  ;;  %vm1750_vm10 = vmmov %vm1746_vm15  ;;  %vm1756_vm15 = vcmp.lt.s32.totalorder %v1097_v5, 112 }
  0xcf   :  { %v132_v47 = vpop.permute.xlu0 %131  ;;  %v114_v54 = vsel %vm1751_vm8, %v109_v34, %v103_v45 }
  0xd0   :  { %v143_v50 = vsel %vm1743_vm11, %v138_v2, %v132_v47  ;;  %v142_v51 = vsel %vm1744_vm1, %v132_v47, %v134_v14  ;;  %vm1752_vm11 = vmmov %vm1751_vm8  ;;  %vm1758_vm8 = vcmp.lt.s32.totalorder %v1097_v5, 113 }
  0xd1   :  { %827 = vmatpush.msk.msra.mxu0 %vm1749_vm7, %v143_v50  ;;  %835 = vmatpush.msk.msra.mxu1 %vm1750_vm10, %v142_v51  ;;  %v113_v55 = vsel %vm1752_vm11, %v103_v45, %v105_v25  ;;  %vm1754_vm1 = vmmov %vm1753_vm9  ;;  %vm1755_vm7 = vcmp.lt.s32.totalorder %v1097_v5, 111  ;;  %vm1757_vm10 = vcmp.le.s32.totalorder %v1104_v11, 14 }
  0xd2   :  { %vm1760_vm11 = vmmov %vm1755_vm7 }
  0xd3   :  { %828 = vmatpush.msk.msra.mxu0 %vm1399_vm14, %v114_v54  ;;  %836 = vmatpush.msk.msra.mxu1 %vm1411_vm0, %v113_v55 }
  0xd4   :  { %809 = vmatmul.msk.f32.vlgmr.msra.gmra.mxu0 %vm1753_vm9, %v338_v26  ;;  %811 = vmatmul.msk.f32.vlgmr.msra.gmra.mxu1 %vm1754_vm1, %v338_v26  ;;  %vm1761_vm9 = vcmp.le.s32.totalorder %v1102_v10, 14 }
  0xd5   :  { %816 = vmatmul.msk.f32.gmra.mxu3 %vm1754_vm1, %v339_v30 }
 0x144   :  { %v446_v8 = vpop.f32.mrf.mxu2 }
 0x145   :  { %v483_v9 = vadd.f32 %v479_v57, %v446_v8 }
 0x147   :  { %v1450_v12 = vmax.f32 %v483_v9, 0.0 }
 0x14e   :  { %v469_v1 = vpop.f32.mrf.mxu3 }
 0x14f   :  { %v484_v6 = vadd.f32 %v479_v57, %v469_v1 }
 0x151   :  { %v400_v58 = vpop.f32.mrf.mxu0  ;;  %v423_v59 = vpop.f32.mrf.mxu1  ;;  %v488_v7 = vmax.f32 %v484_v6, 0.0 }
 0x152   :  { %v481_v60 = vadd.f32 %v479_v57, %v400_v58  ;;  %v482_v61 = vadd.f32 %v479_v57, %v423_v59 }
 0x154   :  { %v1429_v62 = vmax.f32 %v481_v60, 0.0  ;;  %v1431_v63 = vmax.f32 %v482_v61, 0.0 }
 0x156   :  { %633 = vrot.lane.b32.xlu0 %v1429_v62, %s979_s0  ;;  %551 = vrot.lane.b32.xlu2 %v1431_v63, %s983_s30 }
 0x157   :  { %615 = vrot.lane.b32.xlu1 %v1431_v63, %s980_s3 }
 0x15e   :  { %613 = vrot.lane.b32.xlu0 %v1429_v62, %s980_s3  ;;  %595 = vrot.lane.b32.xlu2 %v1431_v63, %s981_s28 }
 0x15f   :  { %511 = vrot.lane.b32.xlu1 %v1431_v63, %s985_s7 }
 0x166   :  { %593 = vrot.lane.b32.xlu0 %v1429_v62, %s981_s28  ;;  %639 = vrot.lane.b32.xlu2 %v488_v7, %s979_s0 }
 0x167   :  { %491 = vrot.lane.b32.xlu1 %v1431_v63, %s986_s8 }
 0x16e   :  { %573 = vrot.lane.b32.xlu0 %v1429_v62, %s982_s29  ;;  %619 = vrot.lane.b32.xlu2 %v488_v7, %s980_s3 }
 0x16f   :  { %637 = vrot.lane.b32.xlu1 %v1450_v12, %s979_s0 }
 0x176   :  { %599 = vrot.lane.b32.xlu2 %v488_v7, %s981_s28  ;;  %635 = vrot.lane.b32.xlu0 %v1431_v63, %s979_s0 }
 0x177   :  { %617 = vrot.lane.b32.xlu1 %v1450_v12, %s980_s3 }
 0x17e   :  { %579 = vrot.lane.b32.xlu2 %v488_v7, %s982_s29  ;;  %531 = vrot.lane.b32.xlu0 %v1431_v63, %s984_s6 }
 0x17f   :  { %597 = vrot.lane.b32.xlu1 %v1450_v12, %s981_s28 }
 0x186   :  { %535 = vrot.lane.b32.xlu2 %v488_v7, %s984_s6  ;;  %575 = vrot.lane.b32.xlu0 %v1431_v63, %s982_s29 }
 0x187   :  { %577 = vrot.lane.b32.xlu1 %v1450_v12, %s982_s29 }
 0x18e   :  { %513 = vrot.lane.b32.xlu2 %v1450_v12, %s985_s7  ;;  %553 = vrot.lane.b32.xlu0 %v1450_v12, %s983_s30 }
 0x18f   :  { %555 = vrot.lane.b32.xlu1 %v488_v7, %s983_s30 }
 0x196   :  { %493 = vrot.lane.b32.xlu2 %v1450_v12, %s986_s8  ;;  %515 = vrot.lane.b32.xlu0 %v488_v7, %s985_s7 }
 0x197   :  { %533 = vrot.lane.b32.xlu1 %v1450_v12, %s984_s6 }
 0x19e   :  { %529 = vrot.lane.b32.xlu2 %v1429_v62, %s984_s6  ;;  %495 = vrot.lane.b32.xlu0 %v488_v7, %s986_s8 }
 0x19f   :  { %549 = vrot.lane.b32.xlu1 %v1429_v62, %s983_s30 }
 0x1a6   :  { %776 = vperm.xlu2 %897, %v773_v13   ;;  %509 = vrot.lane.b32.xlu0 %v1429_v62, %s985_s7 }
 0x1a7   :  { %489 = vrot.lane.b32.xlu1 %v1429_v62, %s986_s8 }
 0x1b0   :  { %v1494_v14 = vpop.permute.xlu2 %551 }
 0x1b8   :  { %v596_v16 = vpop.permute.xlu2 %595 }
 0x1c0   :  { %v640_v19 = vpop.permute.xlu2 %639 }
 0x1c8   :  { %v634_v20 = vpop.permute.xlu0 %633  ;;  %v620_v25 = vpop.permute.xlu2 %619 }
 0x1c9   :  { %v616_v21 = vpop.permute.xlu1 %615  ;;  %v644_v23 = vsel %vm1755_vm7, %v640_v19, %v634_v20  ;;  %vm1763_vm7 = vmmov %vm1754_vm1 }
 0x1ca   :  { %877 = vmatpush.msk.msrb.mxu3 %vm1114_vm3, %v644_v23  ;;  %vm1759_vm3 = vcmp.lt.s32.totalorder %v1097_v5, 127  ;;  %810 = vmatmul.msk.f32.gmra.mxu0 %vm1763_vm7, %v339_v30 }
 0x1d0   :  { %v614_v26 = vpop.permute.xlu0 %613  ;;  %v600_v27 = vpop.permute.xlu2 %599 }
 0x1d1   :  { %v1500_v2 = vpop.permute.xlu1 %511  ;;  %v624_v3 = vsel %vm1756_vm15, %v620_v25, %v614_v26  ;;  %vm1764_vm15 = vmmov %vm1754_vm1 }
 0x1d2   :  { %878 = vmatpush.msk.msrb.mxu3 %vm1757_vm10, %v624_v3  ;;  %812 = vmatmul.msk.f32.gmra.mxu1 %vm1764_vm15, %v339_v30  ;;  %vm1765_vm10 = vmmov %vm1760_vm11  ;;  %vm1776_vm15 = vnez %v1694_v28 }
 0x1d8   :  { %v594_v31 = vpop.permute.xlu0 %593  ;;  %v580_v15 = vpop.permute.xlu2 %579 }
 0x1d9   :  { %v1506_v32 = vpop.permute.xlu1 %491  ;;  %v604_v34 = vsel %vm1758_vm8, %v600_v27, %v594_v31  ;;  %vm1767_vm8 = vcmp.lt.s32.totalorder %v1097_v5, 112 }
 0x1da   :  { %879 = vmatpush.msk.msrb.mxu3 %vm1165_vm12, %v604_v34  ;;  %vm1762_vm12 = vmmov %vm1754_vm1 }
 0x1db   :  { %814 = vmatmul.msk.f32.gmra.mxu2 %vm1762_vm12, %v339_v30  ;;  %vm1771_vm12 = vcmp.le.s32.totalorder %v1186_v40, 14 }
 0x1e0   :  { %v574_v35 = vpop.permute.xlu0 %573  ;;  %v536_v59 = vpop.permute.xlu2 %535 }
 0x1e1   :  { %v638_v36 = vpop.permute.xlu1 %637  ;;  %v584_v41 = vsel %vm1759_vm3, %v580_v15, %v574_v35  ;;  %vm1768_vm3 = vcmp.le.s32.totalorder %v1120_v18, 14 }
 0x1e2   :  { %v641_v37 = vsel %vm1760_vm11, %v638_v36, %v640_v19  ;;  %880 = vmatpush.msk.msrb.mxu3 %vm1761_vm9, %v584_v41  ;;  %vm1769_vm11 = vmmov %vm1767_vm8  ;;  %v653_v19 = vld [vmem:[#allocation7] sm:$0xff] }
 0x1e3   :  { %869 = vmatpush.msk.msrb.mxu2 %vm1132_vm6, %v641_v37  ;;  %vm1766_vm6 = vmmov %vm1765_vm10  ;;  %v623_v51 = vsel %vm1769_vm11, %v614_v26, %v616_v21  ;;  %vm1783_vm11 = vcmp.lt.s32.totalorder %v1097_v5, 1 }
 0x1e4   :  { %764 = vmatpush.msrb.mxu3 %v488_v7  ;;  %vm1770_vm9 = vmmov %vm1767_vm8 }
 0x1e8   :  { %v636_v42 = vpop.permute.xlu0 %635  ;;  %v514_v28 = vpop.permute.xlu2 %513 }
 0x1e9   :  { %v618_v45 = vpop.permute.xlu1 %617  ;;  %v643_v47 = vsel %vm1765_vm10, %v634_v20, %v636_v42  ;;  %v642_v22 = vsel %vm1766_vm6, %v636_v42, %v638_v36  ;;  %vm1777_vm10 = vcmp.lt.s32.totalorder %v1097_v5, 127 }
 0x1ea   :  { %853 = vmatpush.msk.msrb.mxu0 %vm1214_vm13, %v643_v47  ;;  %861 = vmatpush.msk.msrb.mxu1 %vm1222_vm4, %v642_v22  ;;  %v621_v50 = vsel %vm1767_vm8, %v618_v45, %v620_v25  ;;  %v622_v54 = vsel %vm1770_vm9, %v616_v21, %v618_v45  ;;  %vm1772_vm13 = vcmp.le.s32.totalorder %v1195_v44, 14  ;;  %vm1773_vm4 = vcmp.lt.s32.totalorder %v1097_v5, 113  ;;  %vm1779_vm6 = vmmov %vm1777_vm10 }
 0x1eb   :  { %870 = vmatpush.msk.msrb.mxu2 %vm1768_vm3, %v621_v50  ;;  %v603_v46 = vsel %vm1773_vm4, %v594_v31, %v596_v16  ;;  %vm1774_vm1 = vmmov %vm1773_vm4  ;;  %vm1781_vm3 = vcmp.le.s32.totalorder %v1193_v43, 14  ;;  %vm1784_vm9 = vcmp.ge.s32.totalorder %v1118_v17, 1  ;;  %vm1787_vm4 = vcmp.lt.s32.totalorder %v1097_v5, 15 }
 0x1ec   :  { %854 = vmatpush.msk.msrb.mxu0 %vm1771_vm12, %v623_v51  ;;  %862 = vmatpush.msk.msrb.mxu1 %vm1772_vm13, %v622_v54  ;;  %vm1775_vm7 = vmmov %vm1774_vm1  ;;  %vm1786_vm13 = vcmp.ge.s32.totalorder %v1102_v10, 1 }
 0x1ed   :  { %vm1780_vm8 = vmmov %vm1779_vm6 }
 0x1ee   :  { %855 = vmatpush.msk.msrb.mxu0 %vm1240_vm5, %v603_v46  ;;  %vm1778_vm5 = vcmp.le.s32.totalorder %v1184_v39, 14  ;;  %vm1785_vm12 = vmmov %vm1783_vm11 }
 0x1f0   :  { %v532_v49 = vpop.permute.xlu0 %531 }
 0x1f1   :  { %v598_v55 = vpop.permute.xlu1 %597 }
 0x1f2   :  { %v602_v57 = vsel %vm1774_vm1, %v596_v16, %v598_v55  ;;  %v601_v58 = vsel %vm1775_vm7, %v598_v55, %v600_v27  ;;  %vm1788_vm1 = vmmov %vm1787_vm4  ;;  %vm1789_vm7 = vnez %v1711_v4 }
 0x1f3   :  { %863 = vmatpush.msk.msrb.mxu1 %vm1253_vm2, %v602_v57  ;;  %871 = vmatpush.msk.msrb.mxu2 %vm1776_vm15, %v601_v58  ;;  %vm1782_vm2 = vcmp.le.s32.totalorder %v1118_v17, 14  ;;  %vm1790_vm15 = vnez %v1708_v0 }
 0x1f8   :  { %v576_v60 = vpop.permute.xlu0 %575 }
 0x1f9   :  { %v578_v61 = vpop.permute.xlu1 %577  ;;  %v583_v53 = vsel %vm1777_vm10, %v574_v35, %v576_v60  ;;  %vm1791_vm10 = vcmp.lt.s32.totalorder %v1097_v5, 16 }
 0x1fa   :  { %856 = vmatpush.msk.msrb.mxu0 %vm1778_vm5, %v583_v53  ;;  %v582_v1 = vsel %vm1779_vm6, %v576_v60, %v578_v61  ;;  %v581_v6 = vsel %vm1780_vm8, %v578_v61, %v580_v15  ;;  %v518_v10 = vsel %vm1791_vm10, %v1500_v2, %v514_v28  ;;  %vm1792_vm5 = vmmov %vm1791_vm10  ;;  %vm1793_vm6 = vcmp.ge.s32.totalorder %v1120_v18, 1 }
 0x1fb   :  { %864 = vmatpush.msk.msrb.mxu1 %vm1781_vm3, %v582_v1  ;;  %872 = vmatpush.msk.msrb.mxu2 %vm1782_vm2, %v581_v6  ;;  %vm1794_vm8 = vcmp.ge.s32.totalorder %v1104_v11, 1  ;;  %vm1795_vm3 = vcmp.lt.s32.totalorder %v1097_v5, 17  ;;  %vm1796_vm2 = vnez %v1718_v24  ;;  %vm1804_vm10 = vcmp.lt.s32.totalorder %v1097_v5, 15 }
 0x1fc   :  { %704 = vmatpush.msrb.mxu0 %v1429_v62  ;;  %v494_v62 = vpop.permute.xlu2 %493 }
 0x1fd   :  { %724 = vmatpush.msrb.mxu1 %v1431_v63  ;;  %744 = vmatpush.msrb.mxu2 %v1450_v12  ;;  %v498_v4 = vsel %vm1795_vm3, %v1506_v32, %v494_v62 }
 0x200   :  { %v554_v56 = vpop.permute.xlu0 %553 }
 0x201   :  { %v556_v7 = vpop.permute.xlu1 %555  ;;  %v558_v8 = vsel %vm1783_vm11, %v1494_v14, %v554_v56  ;;  %vm1797_vm11 = vcmask 588800  }
 0x202   :  { %873 = vmatpush.msk.msrb.mxu2 %vm1784_vm9, %v558_v8  ;;  %v557_v9 = vsel %vm1785_vm12, %v554_v56, %v556_v7  ;;  %vm1798_vm9 = vmmov %vm1795_vm3  ;;  %vm1808_vm3 = vcmp.lt.s32.totalorder %v1097_v5, 16 }
 0x203   :  { %881 = vmatpush.msk.msrb.mxu3 %vm1786_vm13, %v557_v9  ;;  %vm1799_vm13 = vmmov %vm1785_vm12 }
 0x204   :  { %v530_v20 = vpop.permute.xlu2 %529 }
 0x205   :  { %v540_v24 = vsel %vm1804_vm10, %v536_v59, %v530_v20 }
 0x208   :  { %v516_v13 = vpop.permute.xlu0 %515 }
 0x209   :  { %v534_v63 = vpop.permute.xlu1 %533  ;;  %v517_v17 = vsel %vm1792_vm5, %v514_v28, %v516_v13  ;;  %vm1805_vm5 = vmmov %vm1804_vm10 }
 0x20a   :  { %v538_v12 = vsel %vm1787_vm4, %v532_v49, %v534_v63  ;;  %v537_v16 = vsel %vm1788_vm1, %v534_v63, %v536_v59  ;;  %vm1800_vm4 = vnez %v1724_v29  ;;  %vm1801_vm1 = vcmp.ge.s32.totalorder %v1184_v39, 1 }
 0x20b   :  { %874 = vmatpush.msk.msrb.mxu2 %vm1789_vm7, %v538_v12  ;;  %882 = vmatpush.msk.msrb.mxu3 %vm1790_vm15, %v537_v16  ;;  %vm1802_vm7 = vcmp.ge.s32.totalorder %v1193_v43, 1  ;;  %vm1803_vm15 = vmmov %vm1797_vm11  ;;  %v539_v25 = vsel %vm1805_vm5, %v530_v20, %v532_v49 }
 0x20c   :  { %v777_v31 = vpop.permute.xlu2 %776 }
 0x20d   :  { %875 = vmatpush.msk.msrb.mxu2 %vm1793_vm6, %v518_v10  ;;  %883 = vmatpush.msk.msrb.mxu3 %vm1794_vm8, %v517_v17  ;;  %vm1806_vm6 = vnez %v1727_v33  ;;  %vm1807_vm8 = vnez %v1732_v38 }
 0x20f   :  { %876 = vmatpush.msk.msrb.mxu2 %vm1796_vm2, %v498_v4  ;;  %vm1809_vm2 = vmmov %vm1808_vm3 }
 0x210   :  { %819 = vmatmul.msk.f32.vlgmr.msrb.gmra.mxu2 %vm1797_vm11, %v653_v19  ;;  %v496_v0 = vpop.permute.xlu0 %495  ;;  %vm1810_vm11 = vcmp.ge.s32.totalorder %v1186_v40, 1 }
 0x211   :  { %v550_v21 = vpop.permute.xlu1 %549  ;;  %v497_v18 = vsel %vm1798_vm9, %v494_v62, %v496_v0  ;;  %vm1811_vm9 = vcmp.ge.s32.totalorder %v1195_v44, 1  ;;  %v472_v44 = vpop.f32.mrf.mxu3 }
 0x212   :  { %v560_v11 = vsel %vm1785_vm12, %v556_v7, %v550_v21  ;;  %v559_v23 = vsel %vm1799_vm13, %v550_v21, %v1494_v14  ;;  %884 = vmatpush.msk.msrb.mxu3 %vm1800_vm4, %v497_v18  ;;  %vm1812_vm12 = vcmp.lt.s32.totalorder %v1097_v5, 17  ;;  %vm1814_vm4 = vmmov %vm1803_vm15 }
 0x213   :  { %857 = vmatpush.msk.msrb.mxu0 %vm1801_vm1, %v560_v11  ;;  %865 = vmatpush.msk.msrb.mxu1 %vm1802_vm7, %v559_v23  ;;  %vm1813_vm13 = vmmov %vm1812_vm12 }
 0x214   :  { %820 = vmatmul.msk.f32.vlgmr.msrb.gmra.mxu3 %vm1803_vm15, %v653_v19  ;;  %vm1815_vm1 = vmmov %vm1814_vm4 }
 0x215   :  { %858 = vmatpush.msk.msrb.mxu0 %vm1806_vm6, %v540_v24  ;;  %866 = vmatpush.msk.msrb.mxu1 %vm1807_vm8, %v539_v25 }
 0x218   :  { %v510_v29 = vpop.permute.xlu0 %509 }
 0x219   :  { %v490_v39 = vpop.permute.xlu1 %489  ;;  %v520_v43 = vsel %vm1808_vm3, %v516_v13, %v510_v29  ;;  %v519_v14 = vsel %vm1809_vm2, %v510_v29, %v1500_v2 }
 0x21a   :  { %859 = vmatpush.msk.msrb.mxu0 %vm1810_vm11, %v520_v43  ;;  %867 = vmatpush.msk.msrb.mxu1 %vm1811_vm9, %v519_v14  ;;  %v500_v33 = vsel %vm1812_vm12, %v496_v0, %v490_v39  ;;  %v499_v38 = vsel %vm1813_vm13, %v490_v39, %v1506_v32 }
 0x21c   :  { %860 = vmatpush.msk.msrb.mxu0 %vm1399_vm14, %v500_v33  ;;  %868 = vmatpush.msk.msrb.mxu1 %vm1411_vm0, %v499_v38 }
 0x21d   :  { %817 = vmatmul.msk.f32.vlgmr.msrb.gmra.mxu0 %vm1814_vm4, %v653_v19  ;;  %818 = vmatmul.msk.f32.vlgmr.msrb.gmra.mxu1 %vm1815_vm1, %v653_v19 }
 0x247   :  { %v403_v26 = vpop.f32.mrf.mxu0 }
 0x24f   :  { %v426_v2 = vpop.f32.mrf.mxu1 }
 0x25e   :  { %v449_v40 = vpop.f32.mrf.mxu2 }
 0x293   :  { %v750_v3 = vpop.f32.mrf.mxu2 }
 0x294   :  { %v751_v27 = vadd.f32 %v750_v3, %v449_v40 }
 0x296   :  { %v781_v34 = vadd.f32 %v777_v31, %v751_v27 }
 0x297   :  { %v770_v5 = vpop.f32.mrf.mxu3 }
 0x298   :  { %v785_v32 = vmax.f32 %v781_v34, 0.0  ;;  %v771_v15 = vadd.f32 %v770_v5, %v472_v44 }
 0x29a   :  { %789 = vst [vmem:[#allocation9 + $0x10] sm:$0xff] %v785_v32  ;;  %v782_v48 = vadd.f32 %v777_v31, %v771_v15  ;;  %v710_v35 = vpop.f32.mrf.mxu0  ;;  %v730_v52 = vpop.f32.mrf.mxu1 }
 0x29b   :  { %v711_v36 = vadd.f32 %v710_v35, %v403_v26  ;;  %v731_v41 = vadd.f32 %v730_v52, %v426_v2 }
 0x29c   :  { %v786_v37 = vmax.f32 %v782_v48, 0.0 }
 0x29d   :  { %v779_v30 = vadd.f32 %v777_v31, %v711_v36  ;;  %v780_v42 = vadd.f32 %v777_v31, %v731_v41 }
 0x29e   :  { %790 = vst [vmem:[#allocation9 + $0x18] sm:$0xff] %v786_v37 }
 0x29f   :  { %v783_v45 = vmax.f32 %v779_v30, 0.0  ;;  %v784_v47 = vmax.f32 %v780_v42, 0.0 }
 0x2a1   :  { %787 = vst [vmem:[#allocation9] sm:$0xff] %v783_v45 }
 0x2a2   :  { %788 = vst [vmem:[#allocation9 + $0x8] sm:$0xff] %v784_v47 }
 0x2a3   :  { %801 = dma.vmem_to_hbm [thread:$0]  %s797_s15, 512, %s799_s18, [#allocation6]  }
 0x2a4   :  { %975 = dma.done.wait [#allocation6], 512  }
 0x2a5   :  { %976 = vsyncadd [#allocation6], 4294966784 }
 0x2a6   :  { %806 = vsyncpa [#allocation5], 1 }
 0x2a7   :  { %807 = vsyncpa [#allocation8], 1 }
 0x2a8   :  { %808 = vsyncpa [#allocation6], 1 }

</bundles_post_ra>
